<compile_context>
chip_gen: v7x
topology: tpu7x:2x2x1
jax: 0.10.0
libtpu: 0.0.40
codegen_flags: <defaults>
</compile_context>

<pallas_src>
import functools

import jax
import jax.numpy as jnp
from jax.experimental import pallas as pl
from jax.experimental.pallas import tpu as pltpu

LANES = 128               # lane width (last dim of every block)
SUBLANE_F32 = 8           # f32 sublane tile
CHUNK_ROWS = 128          # (128,128) f32 chunk = 16 vregs/operand -> vreg-resident
CHUNK_UNROLL = 8          # partial unroll of the in-tile chunk loop
VMEM_LIMIT_BYTES = 48 * 1024 * 1024   # headroom under v7x's 64 MiB/TC physical VMEM


def _device_kind() -> str:
    try:
        return jax.devices()[0].device_kind.lower()
    except Exception:
        return ""


def _num_tensorcores(kind: str) -> int:
    # 2 TensorCores visible to a "parallel" grid axis: v4 / v5p (megacore), v7x.
    # v5e / v6e have a single TC (v2/v3 cores are separate JAX devices).
    return 2 if any(s in kind for s in ("v4", "v5p", "v7")) else 1


def _round_up(x: int, m: int) -> int:
    return ((x + m - 1) // m) * m


def _mse_partial_kernel(pred_ref, tgt_ref, out_ref, *, tile_rows, valid_rows,
                        tiles_per_shard, first_masked_tile, needs_mask):
    c = pl.program_id(0)          # TensorCore shard (parallel axis)
    i = pl.program_id(1)          # reduction step (arbitrary axis)

    # The output block (1, 8, 128) stays resident across the reduction axis and
    # is the accumulator; zero it on the first step of each shard.
    @pl.when(i == 0)
    def _():
        out_ref[...] = jnp.zeros_like(out_ref)

    global_tile = c * tiles_per_shard + i
    row_base = global_tile * tile_rows

    def one_chunk(r0, nrows, acc, masked):
        p = pred_ref[pl.ds(r0, nrows), :].astype(jnp.float32)
        t = tgt_ref[pl.ds(r0, nrows), :].astype(jnp.float32)
        d = p - t
        sq = d * d
        if masked:
            # Zero rows past the end of the (rows, 128) view.  jnp.where also
            # discards garbage/NaN read from the out-of-bounds block region.
            row_ids = (row_base + r0 +
                       jax.lax.broadcasted_iota(jnp.int32, (nrows, LANES), 0))
            sq = jnp.where(row_ids < valid_rows, sq, 0.0)
        # Sublane-aligned (nrows,128) -> (8,128) partial sum: pure VPU adds.
        return acc + sq.reshape(nrows // SUBLANE_F32, SUBLANE_F32, LANES).sum(0)

    def tile_sum(masked):
        acc = jnp.zeros((SUBLANE_F32, LANES), jnp.float32)
        n_full = tile_rows // CHUNK_ROWS
        rem = tile_rows % CHUNK_ROWS
        if n_full > 0:
            def body(k, a):
                r0 = pl.multiple_of(k * CHUNK_ROWS, CHUNK_ROWS)
                return one_chunk(r0, CHUNK_ROWS, a, masked)
            acc = jax.lax.fori_loop(0, n_full, body, acc,
                                    unroll=min(CHUNK_UNROLL, n_full))
        if rem:
            acc = one_chunk(n_full * CHUNK_ROWS, rem, acc, masked)
        return acc

    if needs_mask:
        # Only the tile(s) that can overrun `valid_rows` (the ragged last tile
        # and/or the clamped shard-duplicate tile) pay for the mask.
        @pl.when(global_tile < first_masked_tile)
        def _():
            out_ref[...] += tile_sum(False)[None]

        @pl.when(global_tile >= first_masked_tile)
        def _():
            out_ref[...] += tile_sum(True)[None]
    else:
        out_ref[...] += tile_sum(False)[None]


def mse_loss(predicted_noise: jax.Array, target_noise: jax.Array,
             *, max_tile_rows: int | None = None) -> jax.Array:
    """Equivalent of nn.MSELoss()(predicted_noise, target_noise) -> scalar mean."""
    assert predicted_noise.shape == target_noise.shape
    n = predicted_noise.size
    out_dtype = jnp.result_type(predicted_noise.dtype, target_noise.dtype)

    p = predicted_noise.reshape(-1)
    t = target_noise.reshape(-1)

    # dtype-aware sublane packing: f32 -> 8, bf16/f16 -> 16, int8/fp8 -> 32.
    min_itemsize = min(p.dtype.itemsize, t.dtype.itemsize)
    max_itemsize = max(p.dtype.itemsize, t.dtype.itemsize)
    sublane = max(SUBLANE_F32, 32 // max(min_itemsize, 1))

    # Tiny inputs: XLA's fused reduce beats the pallas_call launch overhead.
    # TODO(synk): raise this threshold (e.g. to ~1M elements) in production.
    if n < sublane * LANES:
        d = p.astype(jnp.float32) - t.astype(jnp.float32)
        return jnp.mean(d * d).astype(out_dtype)

    # Copy-free (rows, 128) view of the lane-aligned bulk; the <128-element
    # ragged tail (if any) is reduced below with a tiny jnp.sum instead of
    # padding/copying the full inputs.
    bulk = (n // LANES) * LANES
    rows = bulk // LANES
    pb = p if bulk == n else p[:bulk]
    tb = t if bulk == n else t[:bulk]
    pb = pb.reshape(rows, LANES)
    tb = tb.reshape(rows, LANES)

    kind = _device_kind()
    # Per-input HBM block: ~8 MiB on v7x (amortise per-step overhead against
    # ~1.6 TB/s per TC), ~4 MiB elsewhere.  2 inputs x 2 pipeline buffers stays
    # well inside the VMEM limit on every generation.
    target_block_bytes = (8 << 20) if "v7" in kind else (4 << 20)
    if max_tile_rows is None:
        max_tile_rows = target_block_bytes // (LANES * max_itemsize)
    max_tile_rows = max(sublane, _round_up(max_tile_rows, sublane))

    tile_rows = min(max_tile_rows, _round_up(rows, sublane))
    total_tiles = pl.cdiv(rows, tile_rows)

    # Shard tiles across TensorCores only on 2-TC chips, and only when the
    # split is even (or large enough that one clamped duplicate tile is
    # negligible).  Single-TC v5e/v6e always use one shard.
    num_tc = _num_tensorcores(kind)
    if num_tc >= 2 and total_tiles >= 2 and (total_tiles % 2 == 0 or total_tiles >= 8):
        num_shards = 2
    else:
        num_shards = 1
    tiles_per_shard = pl.cdiv(total_tiles, num_shards)

    needs_clamp = num_shards * tiles_per_shard > total_tiles
    needs_mask = (rows % tile_rows != 0) or needs_clamp
    # First global tile index that can reach past `rows` (== total_tiles when
    # rows divides evenly, so then only clamped duplicate tiles get masked).
    first_masked_tile = rows // tile_rows

    if needs_clamp:
        def in_map(c, i):
            # Clamp the fully-overrunning tile of the last shard back in bounds;
            # its (duplicate) contribution is zeroed by the in-kernel row mask.
            return (jnp.minimum(c * tiles_per_shard + i, total_tiles - 1), 0)
    else:
        def in_map(c, i):
            return (c * tiles_per_shard + i, 0)

    kernel = functools.partial(
        _mse_partial_kernel,
        tile_rows=tile_rows,
        valid_rows=rows,
        tiles_per_shard=tiles_per_shard,
        first_masked_tile=first_masked_tile,
        needs_mask=needs_mask,
    )

    bytes_accessed = (bulk * (pb.dtype.itemsize + tb.dtype.itemsize)
                      + num_shards * SUBLANE_F32 * LANES * 4)

    partial_sums = pl.pallas_call(
        kernel,
        out_shape=jax.ShapeDtypeStruct((num_shards, SUBLANE_F32, LANES), jnp.float32),
        grid_spec=pltpu.PrefetchScalarGridSpec(
            num_scalar_prefetch=0,
            grid=(num_shards, tiles_per_shard),
            in_specs=[
                pl.BlockSpec((tile_rows, LANES), in_map),
                pl.BlockSpec((tile_rows, LANES), in_map),
            ],
            out_specs=pl.BlockSpec((1, SUBLANE_F32, LANES), lambda c, i: (c, 0, 0)),
        ),
        compiler_params=pltpu.CompilerParams(
            dimension_semantics=("parallel", "arbitrary"),
            vmem_limit_bytes=VMEM_LIMIT_BYTES,
        ),
        cost_estimate=pl.CostEstimate(
            flops=3 * bulk, transcendentals=0, bytes_accessed=bytes_accessed),
    )(pb, tb)

    # Single tiny cross-lane reduction + mean, outside the streaming loop.
    total = jnp.sum(partial_sums, dtype=jnp.float32)

    if bulk != n:
        dt = p[bulk:].astype(jnp.float32) - t[bulk:].astype(jnp.float32)
        total = total + jnp.sum(dt * dt)

    return (total / n).astype(out_dtype)


if __name__ == "__main__":
    key = jax.random.PRNGKey(0)
    k1, k2, k3, k4 = jax.random.split(key, 4)

    # Small DDPM-like noise tensors: batch=2, channels=4, spatial=16x16 (NCHW).
    x_shape = (2, 4, 16, 16)
    predicted_noise = jax.random.normal(k1, x_shape, dtype=jnp.float32)
    target_noise = jax.random.normal(k2, x_shape, dtype=jnp.float32)

    loss = jax.block_until_ready(mse_loss(predicted_noise, target_noise))
    ref = jnp.mean((predicted_noise - target_noise) ** 2)
    assert jnp.allclose(loss, ref, rtol=1e-5, atol=1e-6), (loss, ref)

    # Multi-tile path with a ragged (masked) last tile: rows=21, tile_rows=8.
    a = jax.random.normal(k3, (21, 128), dtype=jnp.float32)
    b = jax.random.normal(k4, (21, 128), dtype=jnp.float32)
    loss2 = jax.block_until_ready(mse_loss(a, b, max_tile_rows=8))
    ref2 = jnp.mean((a - b) ** 2)
    assert jnp.allclose(loss2, ref2, rtol=1e-5, atol=1e-6), (loss2, ref2)

    # Lane-misaligned element count: aligned bulk via the kernel, tail in wrapper.
    c_ = jax.random.normal(k3, (9, 150), dtype=jnp.float32)
    d_ = jax.random.normal(k4, (9, 150), dtype=jnp.float32)
    loss3 = jax.block_until_ready(mse_loss(c_, d_))
    ref3 = jnp.mean((c_ - d_) ** 2)
    assert jnp.allclose(loss3, ref3, rtol=1e-5, atol=1e-6), (loss3, ref3)

    # bf16 inputs: (16,128)-packed tiles streamed in bf16, f32 accumulation in-kernel.
    pb16 = predicted_noise.astype(jnp.bfloat16)
    tb16 = target_noise.astype(jnp.bfloat16)
    loss4 = jax.block_until_ready(mse_loss(pb16, tb16))
    ref4 = jnp.mean((pb16.astype(jnp.float32) - tb16.astype(jnp.float32)) ** 2)
    assert jnp.allclose(loss4.astype(jnp.float32), ref4, rtol=2e-2, atol=1e-2), (loss4, ref4)

    print("KERNEL_OK")
</pallas_src>

<mosaic_0001>
module attributes {stable_mosaic.version = 11 : i64} {
  func.func @_mse_partial_kernel(%arg0: i32, %arg1: i32, %arg2: memref<16x128xf32, #tpu.memory_space<vmem>>, %arg3: memref<16x128xf32, #tpu.memory_space<vmem>>, %arg4: memref<1x8x128xf32, #tpu.memory_space<vmem>>) attributes {dimension_semantics = [#tpu.dimension_semantics<parallel>, #tpu.dimension_semantics<arbitrary>], iteration_bounds = array<i64: 1, 1>, scalar_prefetch = 0 : i64, scratch_operands = 0 : i64, tpu.core_type = #tpu.core_type<tc>, window_params = [{transform_indices = @transform_0, window_bounds = array<i64: 16, 128>}, {transform_indices = @transform_1, window_bounds = array<i64: 16, 128>}, {transform_indices = @transform_2, window_bounds = array<i64: 1, 8, 128>}]} {
    %c0_i32 = arith.constant 0 : i32
    %0 = arith.cmpi eq, %arg1, %c0_i32 : i32
    %1 = arith.extui %0 : i1 to i32
    %c0_i32_0 = arith.constant 0 : i32
    %2 = arith.cmpi ne, %1, %c0_i32_0 : i32
    scf.if %2 {
      %cst_11 = arith.constant 0.000000e+00 : f32
      %15 = vector.broadcast %cst_11 : f32 to vector<1x8x128xf32>
      %c0_12 = arith.constant 0 : index
      %c0_13 = arith.constant 0 : index
      %c0_14 = arith.constant 0 : index
      %16 = vector.load %arg4[%c0_12, %c0_13, %c0_14] : memref<1x8x128xf32, #tpu.memory_space<vmem>>, vector<1x8x128xf32>
      tpu.vector_store %arg4[%c0_12, %c0_13, %c0_14], %15 {strides = array<i32>} : memref<1x8x128xf32, #tpu.memory_space<vmem>>, vector<1x8x128xf32>,
    } else {
    }
    %c0 = arith.constant 0 : index
    %c0_1 = arith.constant 0 : index
    %c0_2 = arith.constant 0 : index
    %3 = vector.load %arg4[%c0, %c0_1, %c0_2] : memref<1x8x128xf32, #tpu.memory_space<vmem>>, vector<1x8x128xf32>
    %cst = arith.constant 0.000000e+00 : f32
    %4 = vector.broadcast %cst : f32 to vector<8x128xf32>
    %c0_3 = arith.constant 0 : index
    %c0_4 = arith.constant 0 : index
    %5 = vector.load %arg2[%c0_3, %c0_4] : memref<16x128xf32, #tpu.memory_space<vmem>>, vector<16x128xf32>
    %c0_5 = arith.constant 0 : index
    %c0_6 = arith.constant 0 : index
    %6 = vector.load %arg3[%c0_5, %c0_6] : memref<16x128xf32, #tpu.memory_space<vmem>>, vector<16x128xf32>
    %7 = arith.subf %5, %6 : vector<16x128xf32>
    %8 = arith.mulf %7, %7 : vector<16x128xf32>
    %9 = vector.shape_cast %8 : vector<16x128xf32> to vector<2x8x128xf32>
    %cst_7 = arith.constant dense<0.000000e+00> : vector<8x128xf32>
    %10 = vector.multi_reduction <add>, %9, %cst_7 [0] : vector<2x8x128xf32> to vector<8x128xf32>
    %11 = arith.addf %4, %10 : vector<8x128xf32>
    %12 = vector.shape_cast %11 : vector<8x128xf32> to vector<1x8x128xf32>
    %13 = arith.addf %3, %12 : vector<1x8x128xf32>
    %c0_8 = arith.constant 0 : index
    %c0_9 = arith.constant 0 : index
    %c0_10 = arith.constant 0 : index
    %14 = vector.load %arg4[%c0_8, %c0_9, %c0_10] : memref<1x8x128xf32, #tpu.memory_space<vmem>>, vector<1x8x128xf32>
    tpu.vector_store %arg4[%c0_8, %c0_9, %c0_10], %13 {strides = array<i32>} : memref<1x8x128xf32, #tpu.memory_space<vmem>>, vector<1x8x128xf32>,
    return
  }
  func.func @transform_0(%arg0: i32, %arg1: i32) -> (i32, i32) {
    %c1_i32 = arith.constant 1 : i32
    %0 = arith.muli %arg0, %c1_i32 : i32
    %1 = arith.addi %0, %arg1 : i32
    %c0_i32 = arith.constant 0 : i32
    %c0_i32_0 = arith.constant 0 : i32
    return %1, %c0_i32 : i32, i32
  }
  func.func @transform_1(%arg0: i32, %arg1: i32) -> (i32, i32) {
    %c1_i32 = arith.constant 1 : i32
    %0 = arith.muli %arg0, %c1_i32 : i32
    %1 = arith.addi %0, %arg1 : i32
    %c0_i32 = arith.constant 0 : i32
    %c0_i32_0 = arith.constant 0 : i32
    return %1, %c0_i32 : i32, i32
  }
  func.func @transform_2(%arg0: i32, %arg1: i32) -> (i32, i32, i32) {
    %c0_i32 = arith.constant 0 : i32
    %c0_i32_0 = arith.constant 0 : i32
    %c0_i32_1 = arith.constant 0 : i32
    return %arg0, %c0_i32, %c0_i32_0 : i32, i32, i32
  }
}

</mosaic_0001>

<bundles_post_ra>
// kernel: tpu_custom_call.1
= control target key start
LH: loop header
LB: loop body
LE: loop exit
PB: predicated region body
PF: predicated region fallthrough
CT: control target
= control target key end

     0   :  { %7 = vsyncpa [#allocation3], 0  ;;  %s220_s0 = inlined_call_operand.hbm [shape: f32[16,128], index: 0, kind: input, shape index: {}]   ;;  %s221_s1 = inlined_call_operand.hbm [shape: f32[16,128], index: 1, kind: input, shape index: {}]   ;;  %s222_s2 = inlined_call_operand.hbm [shape: f32[1,8,128], index: 2, kind: output, shape index: {}]  }
   0x1   :  { %8 = vsyncpa [#allocation6], 0 }
   0x2   :  { %9 = vsyncpa [#allocation4], 0  ;;  %s164_s9 = smov [#allocation2]   ;;  %s92_s13 = scalar_lea.hbm %s220_s0, 256 }
   0x3   :  { %s19_s10 = sshll.u32 %s164_s9, 4  ;;  %p93_p0 = scmp.ne.s32.totalorder %s220_s0, %s92_s13  ;;  %s20_s10 = int_to_ptr.vmem [resolvable:$true] %s19_s10 }
   0x4   :  { %p96_p1 = scmp.lt.u32.totalorder %s92_s13, %s220_s0 }
   0x6   :  { %p98_p2 = pnand %p96_p1, %p93_p0 }
   0x8   :  { %101 = shalt.err (!%p98_p2)
}
   0x9   :  { %s102_s18 = scalar_lea.vmem %s20_s10, 256  ;;  %p107_p4 = scmp.lt.s32.totalorder %s20_s10, %s20_s10 }
   0xa   :  { %p103_p3 = scmp.ne.s32.totalorder %s20_s10, %s102_s18  ;;  %p108_p5 = scmp.lt.s32.totalorder %s102_s18, %s102_s18 }
   0xc   :  { %p109_p6 = por %p108_p5, %p107_p4 }
   0xe   :  { %p110_p7 = pnand %p109_p6, %p103_p3 }
  0x10   :  { %113 = shalt.err (!%p110_p7)
}
  0x11   :  { %s165_s19 = smov 128   ;;  %s166_s20 = smov 8  }
  0x12   :  { %25 = dma.hbm_to_vmem [thread:$0]  %s220_s0, 256, %s20_s10, [#allocation3], %s165_s19, %s165_s19, %s166_s20  }
  0x13   :  { %s167_s23 = smov [#allocation5]   ;;  %s114_s27 = scalar_lea.hbm %s221_s1, 256 }
  0x14   :  { %s35_s24 = sshll.u32 %s167_s23, 4  ;;  %p115_p8 = scmp.ne.s32.totalorder %s221_s1, %s114_s27  ;;  %s36_s24 = int_to_ptr.vmem [resolvable:$true] %s35_s24 }
  0x15   :  { %p118_p9 = scmp.lt.u32.totalorder %s114_s27, %s221_s1 }
  0x17   :  { %p120_p10 = pnand %p118_p9, %p115_p8 }
  0x19   :  { %123 = shalt.err (!%p120_p10)
}
  0x1a   :  { %s124_s4 = scalar_lea.vmem %s36_s24, 256  ;;  %p129_p12 = scmp.lt.s32.totalorder %s36_s24, %s36_s24 }
  0x1b   :  { %p125_p11 = scmp.ne.s32.totalorder %s36_s24, %s124_s4  ;;  %p130_p13 = scmp.lt.s32.totalorder %s124_s4, %s124_s4 }
  0x1d   :  { %p131_p0 = por %p130_p13, %p129_p12 }
  0x1f   :  { %p132_p1 = pnand %p131_p0, %p125_p11 }
  0x21   :  { %135 = shalt.err (!%p132_p1)
}
  0x22   :  { %41 = dma.hbm_to_vmem [thread:$0]  %s221_s1, 256, %s36_s24, [#allocation6], %s165_s19, %s165_s19, %s166_s20  }
  0x23   :  { %158 = dma.done.wait [#allocation3], 256  }
  0x24   :  { %159 = vsyncadd [#allocation3], 4294967040 }
  0x25   :  { %160 = dma.done.wait [#allocation6], 256  }
  0x26   :  { %161 = vsyncadd [#allocation6], 4294967040  ;;  %v58_v0 = vld [vmem:[#allocation2] sm:$0xff]  ;;  %v59_v1 = vld [vmem:[#allocation2 + $0x8] sm:$0xff]  ;;  %s168_s6 = smov [#allocation7]  }
  0x27   :  { %v60_v2 = vld [vmem:[#allocation5] sm:$0xff]  ;;  %v61_v3 = vld [vmem:[#allocation5 + $0x8] sm:$0xff]  ;;  %s76_s7 = sshll.u32 %s168_s6, 4  ;;  %s77_s7 = int_to_ptr.vmem [resolvable:$true] %s76_s7 }
  0x28   :  { %v62_v4 = vsub.f32 %v58_v0, %v60_v2  ;;  %v63_v5 = vsub.f32 %v59_v1, %v61_v3  ;;  %s136_s8 = scalar_lea.vmem %s77_s7, 128  ;;  %p141_p3 = scmp.lt.s32.totalorder %s77_s7, %s77_s7 }
  0x29   :  { %p137_p2 = scmp.ne.s32.totalorder %s77_s7, %s136_s8  ;;  %p142_p4 = scmp.lt.s32.totalorder %s136_s8, %s136_s8 }
  0x2a   :  { %v64_v6 = vmul.f32 %v62_v4, %v62_v4  ;;  %v65_v7 = vmul.f32 %v63_v5, %v63_v5 }
  0x2b   :  { %p143_p5 = por %p142_p4, %p141_p3 }
  0x2c   :  { %v66_v8 = vadd.f32 %v65_v7, %v64_v6 }
  0x2d   :  { %p144_p6 = pnand %p143_p5, %p137_p2 }
  0x2e   :  { %69 = vst [vmem:[#allocation7] sm:$0xff] %v66_v8 }
  0x2f   :  { %147 = shalt.err (!%p144_p6)
}
  0x30   :  { %s148_s10 = scalar_lea.hbm %s222_s2, 128 }
  0x31   :  { %p149_p7 = scmp.ne.s32.totalorder %s222_s2, %s148_s10  ;;  %p152_p8 = scmp.lt.u32.totalorder %s148_s10, %s222_s2 }
  0x33   :  { %p154_p9 = pnand %p152_p8, %p149_p7 }
  0x35   :  { %157 = shalt.err (!%p154_p9)
}
  0x36   :  { %79 = dma.vmem_to_hbm [thread:$0]  %s77_s7, 128, %s222_s2, [#allocation4]  }
  0x37   :  { %162 = dma.done.wait [#allocation4], 128  }
  0x38   :  { %163 = vsyncadd [#allocation4], 4294967168 }
  0x39   :  { %83 = vsyncpa [#allocation3], 1 }
  0x3a   :  { %84 = vsyncpa [#allocation6], 1 }
  0x3b   :  { %85 = vsyncpa [#allocation4], 1 }

</bundles_post_ra>
